<compile_context>
chip_gen: v6e
topology: v6e:2x2x1
jax: 0.10.0
libtpu: 0.0.40
codegen_flags: <defaults>
</compile_context>

<pallas_src>
import functools

import jax
import jax.numpy as jnp
from jax.experimental import pallas as pl
from jax.experimental.pallas import tpu as pltpu

HIDDEN = 100   # logical hidden width of the DQN tutorial network
LANE = 128     # TPU lane width: feature dims are padded to this


def _num_tensorcores():
    """One batch tile per TensorCore: v7x exposes 2 TCs per chip via a
    'parallel' grid axis; v5e/v6e have 1 (extra steps only add overhead)."""
    try:
        d = jax.devices()[0]
        if d.platform != "tpu":
            return 1
        kind = str(getattr(d, "device_kind", "")).lower()
        if "v7" in kind or "7x" in kind:
            return 2
    except Exception:
        pass
    return 1


def _mlp_kernel(x_ref, small_ref, big_ref, o_ref, *, in_dim):
    # x:     (tb, in_dim)      f32
    # small: (8, 128)          f32  rows [0:in_dim]=w1, in_dim=b1, +1=b2, +2=b3
    # big:   (2, 128, 128)     bf16 [0]=w2, [1]=w3
    # o:     (tb, 128)         out_dtype (lane-dense)
    x = x_ref[...]
    small = small_ref[...]
    w1 = small[0:in_dim, :]
    b1 = small[in_dim:in_dim + 1, :]
    b2 = small[in_dim + 1:in_dim + 2, :]
    b3 = small[in_dim + 2:in_dim + 3, :]

    # ---- layer 1 on the VPU: K = in_dim is tiny (2 for the DQN state), so a
    # (tb,K)x(K,128) matmul would occupy K/128 of the MXU yet pay full pipeline
    # latency. Two broadcast FMAs instead. (If in_dim ever grows past ~8-16,
    # switch this back to a single MXU matmul.)
    acc = x[:, 0:1] * w1[0:1, :]
    for k in range(1, in_dim):                       # static unroll
        acc = acc + x[:, k:k + 1] * w1[k:k + 1, :]
    h1 = jnp.maximum(acc + b1, 0.0)

    # ---- layer 2: dense 128x128 bf16 matmul on the MXU, f32 accumulation.
    h2 = jnp.dot(h1.astype(jnp.bfloat16), big_ref[0],
                 preferred_element_type=jnp.float32) + b2
    h2 = jnp.maximum(h2, 0.0)

    # ---- output layer (no activation); padded output lanes stay zero + b3pad(=0).
    out = jnp.dot(h2.astype(jnp.bfloat16), big_ref[1],
                  preferred_element_type=jnp.float32) + b3
    o_ref[...] = out.astype(o_ref.dtype)


def network_forward(x, packed, *, out_dtype=jnp.bfloat16, num_tiles=None):
    """x: (batch, input_dim) f32; packed: see pack_params.

    Returns the PADDED output (padded_batch, 128). Logical Q-values live at
    [:batch, :output_dim]; consumers should index those lanes/rows directly
    instead of materializing a sliced copy (extra HBM round trip)."""
    small, big = packed["small"], packed["big"]
    batch, in_dim = x.shape
    o_pad = big.shape[2]

    if num_tiles is None:
        num_tiles = _num_tensorcores()

    # One batch tile per TensorCore; tb is a multiple of 16 sublanes so both
    # f32 and bf16 layouts are happy.
    tb = max(16, ((batch + num_tiles - 1) // num_tiles + 15) // 16 * 16)
    padded_batch = tb * num_tiles
    if padded_batch != batch:
        # TODO(synk): for non-power-of-two replay batches, pad once outside the
        # training step instead of paying this standalone pad op per call.
        x = jnp.pad(x, ((0, padded_batch - batch), (0, 0)))

    out = pl.pallas_call(
        functools.partial(_mlp_kernel, in_dim=in_dim),
        out_shape=jax.ShapeDtypeStruct((padded_batch, o_pad), out_dtype),
        grid=(num_tiles,),
        in_specs=[
            pl.BlockSpec((tb, in_dim), lambda i: (i, 0)),      # x: tiled over batch
            pl.BlockSpec(small.shape, lambda i: (0, 0)),        # packed w1+biases
            pl.BlockSpec(big.shape, lambda i: (0, 0, 0)),       # stacked w2,w3
        ],
        out_specs=pl.BlockSpec((tb, o_pad), lambda i: (i, 0)),
        compiler_params=pltpu.CompilerParams(
            dimension_semantics=("parallel",)),                 # 2 TCs on v7x
    )(x, small, big)
    return out


def init_params(key, input_dim, output_dim, hidden=HIDDEN):
    """f32 params at logical shapes; mimics torch.nn.Linear default init
    (U(-1/sqrt(fan_in), 1/sqrt(fan_in)))."""
    ks = jax.random.split(key, 6)

    def linear(kw, kb, fan_in, fan_out):
        bound = 1.0 / jnp.sqrt(jnp.float32(fan_in))
        w = jax.random.uniform(kw, (fan_in, fan_out), jnp.float32, -bound, bound)
        b = jax.random.uniform(kb, (1, fan_out), jnp.float32, -bound, bound)
        return w, b

    w1, b1 = linear(ks[0], ks[1], input_dim, hidden)
    w2, b2 = linear(ks[2], ks[3], hidden, hidden)
    w3, b3 = linear(ks[4], ks[5], hidden, output_dim)
    return {"w1": w1, "b1": b1, "w2": w2, "b2": b2, "w3": w3, "b3": b3}


def pack_params(p, lane=LANE):
    """Pack parameters for the kernel:
      small: (8, lane) f32  — rows [0:in_dim]=w1, then b1, b2, b3 (zero-padded)
      big:   (2, lane, lane) bf16 — stacked w2, w3 (zero-padded)."""
    in_dim, hidden = p["w1"].shape
    out_dim = p["w3"].shape[1]
    rows = ((in_dim + 3 + 7) // 8) * 8

    small = jnp.zeros((rows, lane), jnp.float32)
    small = small.at[0:in_dim, 0:hidden].set(p["w1"])
    small = small.at[in_dim, 0:hidden].set(p["b1"][0])
    small = small.at[in_dim + 1, 0:hidden].set(p["b2"][0])
    small = small.at[in_dim + 2, 0:out_dim].set(p["b3"][0])

    def pad2(a):
        return jnp.pad(a, ((0, lane - a.shape[0]), (0, lane - a.shape[1])))

    big = jnp.stack([pad2(p["w2"]), pad2(p["w3"])]).astype(jnp.bfloat16)
    return {"small": small, "big": big}


def _reference_forward_f32(x, p):
    """Pure f32 reference with the logical (unpadded) weights — PyTorch math."""
    h1 = jnp.maximum(x @ p["w1"] + p["b1"], 0.0)
    h2 = jnp.maximum(h1 @ p["w2"] + p["b2"], 0.0)
    return h2 @ p["w3"] + p["b3"]


def _reference_forward_bf16(x, p, packed, output_dim, out_dtype=jnp.bfloat16):
    """Mirror of the kernel's numerics (f32 layer 1, bf16 weights on layers
    2/3, f32 accumulation, out_dtype final cast)."""
    in_dim = x.shape[1]
    h1 = jnp.maximum(x @ p["w1"] + p["b1"], 0.0)                 # f32, (batch, 100)
    h1 = jnp.pad(h1, ((0, 0), (0, LANE - h1.shape[1])))
    b2 = packed["small"][in_dim + 1:in_dim + 2, :]
    b3 = packed["small"][in_dim + 2:in_dim + 3, :]
    h2 = jnp.maximum(jnp.dot(h1.astype(jnp.bfloat16), packed["big"][0],
                             preferred_element_type=jnp.float32) + b2, 0.0)
    out = jnp.dot(h2.astype(jnp.bfloat16), packed["big"][1],
                  preferred_element_type=jnp.float32) + b3
    out = out.astype(out_dtype).astype(jnp.float32)
    return out[:, :output_dim]


if __name__ == "__main__":
    # DQN tutorial: 2-D (x, y) state, 4 discrete actions. One replay
    # minibatch of 256 states per pallas_call.
    input_dim, output_dim, batch = 2, 4, 256

    key = jax.random.PRNGKey(0)
    k_params, k_x = jax.random.split(key)
    params_f32 = init_params(k_params, input_dim, output_dim)
    packed = pack_params(params_f32)
    x = jax.random.uniform(k_x, (batch, input_dim), jnp.float32)

    out_padded = network_forward(x, packed)          # (padded_batch, 128) bf16
    out_padded = jax.block_until_ready(out_padded)
    assert out_padded.shape[0] >= batch and out_padded.shape[1] == LANE

    # Verification only (the hot path consumes the padded output directly).
    q = out_padded[:batch, :output_dim].astype(jnp.float32)

    # tight check against a reference mirroring the kernel's numerics
    ref_bf16 = _reference_forward_bf16(x, params_f32, packed, output_dim)
    assert jnp.allclose(q, ref_bf16, atol=2e-2, rtol=2e-2)

    # looser check against the pure-f32 (PyTorch-semantics) reference
    ref_f32 = _reference_forward_f32(x, params_f32)
    assert jnp.allclose(q, ref_f32, atol=5e-2, rtol=5e-2)

    print("KERNEL_OK")
</pallas_src>

<mosaic_0001>
module attributes {stable_mosaic.version = 11 : i64} {
  func.func @_mlp_kernel(%arg0: i32, %arg1: memref<256x2xf32, #tpu.memory_space<vmem>>, %arg2: memref<8x128xf32, #tpu.memory_space<vmem>>, %arg3: memref<2x128x128xbf16, #tpu.memory_space<vmem>>, %arg4: memref<256x128xbf16, #tpu.memory_space<vmem>>) attributes {dimension_semantics = [#tpu.dimension_semantics<parallel>], iteration_bounds = array<i64: 1>, scalar_prefetch = 0 : i64, scratch_operands = 0 : i64, tpu.core_type = #tpu.core_type<tc>, window_params = [{transform_indices = @transform_0, window_bounds = array<i64: 256, 2>}, {pipeline_mode = #tpu.pipeline_mode<synchronous>, transform_indices = @transform_1, window_bounds = array<i64: 8, 128>}, {pipeline_mode = #tpu.pipeline_mode<synchronous>, transform_indices = @transform_2, window_bounds = array<i64: 2, 128, 128>}, {transform_indices = @transform_3, window_bounds = array<i64: 256, 128>}]} {
    %c0 = arith.constant 0 : index
    %c0_0 = arith.constant 0 : index
    %0 = vector.load %arg1[%c0, %c0_0] : memref<256x2xf32, #tpu.memory_space<vmem>>, vector<256x2xf32>
    %c0_1 = arith.constant 0 : index
    %c0_2 = arith.constant 0 : index
    %1 = vector.load %arg2[%c0_1, %c0_2] : memref<8x128xf32, #tpu.memory_space<vmem>>, vector<8x128xf32>
    %2 = vector.extract_strided_slice %1 {offsets = [0, 0], sizes = [2, 128], strides = [1, 1]} : vector<8x128xf32> to vector<2x128xf32>
    %3 = vector.extract_strided_slice %1 {offsets = [2, 0], sizes = [1, 128], strides = [1, 1]} : vector<8x128xf32> to vector<1x128xf32>
    %4 = vector.extract_strided_slice %1 {offsets = [3, 0], sizes = [1, 128], strides = [1, 1]} : vector<8x128xf32> to vector<1x128xf32>
    %5 = vector.extract_strided_slice %1 {offsets = [4, 0], sizes = [1, 128], strides = [1, 1]} : vector<8x128xf32> to vector<1x128xf32>
    %6 = vector.extract_strided_slice %0 {offsets = [0, 0], sizes = [256, 1], strides = [1, 1]} : vector<256x2xf32> to vector<256x1xf32>
    %7 = vector.extract_strided_slice %2 {offsets = [0, 0], sizes = [1, 128], strides = [1, 1]} : vector<2x128xf32> to vector<1x128xf32>
    %8 = vector.broadcast %6 : vector<256x1xf32> to vector<256x128xf32>
    %9 = vector.broadcast %7 : vector<1x128xf32> to vector<256x128xf32>
    %10 = arith.mulf %8, %9 : vector<256x128xf32>
    %11 = vector.extract_strided_slice %0 {offsets = [0, 1], sizes = [256, 1], strides = [1, 1]} : vector<256x2xf32> to vector<256x1xf32>
    %12 = vector.extract_strided_slice %2 {offsets = [1, 0], sizes = [1, 128], strides = [1, 1]} : vector<2x128xf32> to vector<1x128xf32>
    %13 = vector.broadcast %11 : vector<256x1xf32> to vector<256x128xf32>
    %14 = vector.broadcast %12 : vector<1x128xf32> to vector<256x128xf32>
    %15 = arith.mulf %13, %14 : vector<256x128xf32>
    %16 = arith.addf %10, %15 : vector<256x128xf32>
    %17 = vector.broadcast %3 : vector<1x128xf32> to vector<256x128xf32>
    %18 = arith.addf %16, %17 : vector<256x128xf32>
    %cst = arith.constant 0.000000e+00 : f32
    %19 = vector.broadcast %cst : f32 to vector<256x128xf32>
    %20 = arith.maximumf %18, %19 : vector<256x128xf32>
    %21 = arith.truncf %20 : vector<256x128xf32> to vector<256x128xbf16>
    %c0_3 = arith.constant 0 : index
    %c0_4 = arith.constant 0 : index
    %c0_5 = arith.constant 0 : index
    %22 = vector.load %arg3[%c0_3, %c0_4, %c0_5] : memref<2x128x128xbf16, #tpu.memory_space<vmem>>, vector<1x128x128xbf16>
    %23 = vector.shape_cast %22 : vector<1x128x128xbf16> to vector<128x128xbf16>
    %cst_6 = arith.constant dense<0.000000e+00> : vector<256x128xf32>
    %24 = tpu.matmul %21, %23, %cst_6 {dimension_numbers = #tpu.dot_dimension_numbers<[1], [0], [0], [1], [0, 0, 1, 1], [], []>} : vector<256x128xbf16>, vector<128x128xbf16>, vector<256x128xf32> -> vector<256x128xf32>
    %25 = vector.broadcast %4 : vector<1x128xf32> to vector<256x128xf32>
    %26 = arith.addf %24, %25 : vector<256x128xf32>
    %cst_7 = arith.constant 0.000000e+00 : f32
    %27 = vector.broadcast %cst_7 : f32 to vector<256x128xf32>
    %28 = arith.maximumf %26, %27 : vector<256x128xf32>
    %29 = arith.truncf %28 : vector<256x128xf32> to vector<256x128xbf16>
    %c1 = arith.constant 1 : index
    %c0_8 = arith.constant 0 : index
    %c0_9 = arith.constant 0 : index
    %30 = vector.load %arg3[%c1, %c0_8, %c0_9] : memref<2x128x128xbf16, #tpu.memory_space<vmem>>, vector<1x128x128xbf16>
    %31 = vector.shape_cast %30 : vector<1x128x128xbf16> to vector<128x128xbf16>
    %cst_10 = arith.constant dense<0.000000e+00> : vector<256x128xf32>
    %32 = tpu.matmul %29, %31, %cst_10 {dimension_numbers = #tpu.dot_dimension_numbers<[1], [0], [0], [1], [0, 0, 1, 1], [], []>} : vector<256x128xbf16>, vector<128x128xbf16>, vector<256x128xf32> -> vector<256x128xf32>
    %33 = vector.broadcast %5 : vector<1x128xf32> to vector<256x128xf32>
    %34 = arith.addf %32, %33 : vector<256x128xf32>
    %35 = arith.truncf %34 : vector<256x128xf32> to vector<256x128xbf16>
    %c0_11 = arith.constant 0 : index
    %c0_12 = arith.constant 0 : index
    %36 = vector.load %arg4[%c0_11, %c0_12] : memref<256x128xbf16, #tpu.memory_space<vmem>>, vector<256x128xbf16>
    tpu.vector_store %arg4[%c0_11, %c0_12], %35 {strides = array<i32>} : memref<256x128xbf16, #tpu.memory_space<vmem>>, vector<256x128xbf16>,
    return
  }
  func.func @transform_0(%arg0: i32) -> (i32, i32) {
    %c0_i32 = arith.constant 0 : i32
    %c0_i32_0 = arith.constant 0 : i32
    return %arg0, %c0_i32 : i32, i32
  }
  func.func @transform_1(%arg0: i32) -> (i32, i32) {
    %c0_i32 = arith.constant 0 : i32
    %c0_i32_0 = arith.constant 0 : i32
    %c0_i32_1 = arith.constant 0 : i32
    return %c0_i32, %c0_i32_0 : i32, i32
  }
  func.func @transform_2(%arg0: i32) -> (i32, i32, i32) {
    %c0_i32 = arith.constant 0 : i32
    %c0_i32_0 = arith.constant 0 : i32
    %c0_i32_1 = arith.constant 0 : i32
    %c0_i32_2 = arith.constant 0 : i32
    return %c0_i32, %c0_i32_0, %c0_i32_1 : i32, i32, i32
  }
  func.func @transform_3(%arg0: i32) -> (i32, i32) {
    %c0_i32 = arith.constant 0 : i32
    %c0_i32_0 = arith.constant 0 : i32
    return %arg0, %c0_i32 : i32, i32
  }
}

</mosaic_0001>

<bundles_post_ra>
// kernel: tpu_custom_call.1
= control target key start
LH: loop header
LB: loop body
LE: loop exit
PB: predicated region body
PF: predicated region fallthrough
CT: control target
= control target key end

     0   :  { %v1620_v2 = vmov 1   ;;  %v1621_v7 = vmov 0   ;;  %s2059_s0 = inlined_call_operand.vmem [shape: f32[256,2], index: 0, kind: input, shape index: {}]   ;;  %s2060_s1 = inlined_call_operand.vmem [shape: f32[8,128], index: 1, kind: input, shape index: {}]   ;;  %s2061_s2 = inlined_call_operand.vmem [shape: bf16[2,128,128], index: 2, kind: input, shape index: {}]   ;;  %s2062_s3 = inlined_call_operand.hbm [shape: bf16[256,128], index: 3, kind: output, shape index: {}]  }
   0x1   :  { %v18_v0 = vld [vmem:[%s2059_s0 + $0x10] sm:$0xff]  ;;  %v16_v1 = vld [vmem:[%s2059_s0] sm:$0xff]  ;;  %1550 = vset.pattern.permute.xlu0 %v1620_v2  ;;  %1548 = vset.pattern.permute.xlu1 %v1620_v2  ;;  %v17_v4 = vld [vmem:[%s2059_s0 + $0x8] sm:$0xff] }
   0x2   :  { %254 = vperm.xlu0 %1550, %v18_v0   ;;  %246 = vperm.xlu1 %1548, %v16_v1   ;;  %v1656_v3 = vld [vmem:[%s2059_s0 + $0x30] sm:$0xff]  ;;  %v19_v6 = vld [vmem:[%s2059_s0 + $0x18] sm:$0xff]  ;;  %v20_v12 = vld [vmem:[%s2059_s0 + $0x20] sm:$0xff] }
   0x3   :  { %v1665_v5 = vld [vmem:[%s2059_s0 + $0x50] sm:$0xff]  ;;  %v1582_v9 = vld [vmem:[%s2061_s2 + $0x38] sm:$0xff]   ;;  %v1584_v14 = vld [vmem:[%s2061_s2 + $0x28] sm:$0xff]  }
   0x4   :  { %v1675_v8 = vld [vmem:[%s2059_s0 + $0x70] sm:$0xff]  ;;  %1447 = vmatprep.subr.bf16.mxu0 %v1582_v9 }
   0x5   :  { %v1683_v10 = vld [vmem:[%s2059_s0 + $0x90] sm:$0xff]  ;;  %1448 = vmatpush3.bf16.msra.mxu0 %v1582_v9 }
   0x6   :  { %270 = vperm.xlu0 %1550, %v1656_v3   ;;  %250 = vperm.xlu1 %1548, %v17_v4   ;;  %v1583_v11 = vld [vmem:[%s2061_s2 + $0x30] sm:$0xff]  }
   0x7   :  { %v1696_v13 = vld [vmem:[%s2059_s0 + $0xb0] sm:$0xff]  ;;  %1449 = vmatprep.subr.bf16.mxu0 %v1583_v11 }
   0x9   :  { %1450 = vmatpush3.bf16.msra.mxu0 %v1583_v11 }
   0xa   :  { %286 = vperm.xlu0 %1550, %v1665_v5   ;;  %1549 = vset.pattern.permute.xlu1 %v1621_v7 }
   0xb   :  { %66 = vperm.xlu1 %1549, %v19_v6   ;;  %1451 = vmatprep.subr.bf16.mxu0 %v1584_v14 }
   0xd   :  { %1452 = vmatpush3.bf16.msra.mxu0 %v1584_v14 }
   0xe   :  { %302 = vperm.xlu0 %1550, %v1675_v8  }
   0xf   :  { %1551 = vset.pattern.permute.xlu1 %v1620_v2 }
  0x10   :  { %258 = vperm.xlu1 %1551, %v19_v6  }
  0x12   :  { %318 = vperm.xlu0 %1550, %v1683_v10  }
  0x14   :  { %1552 = vset.pattern.permute.xlu1 %v1621_v7 }
  0x15   :  { %71 = vperm.xlu1 %1552, %v20_v12  }
  0x16   :  { %334 = vperm.xlu0 %1550, %v1696_v13  }
  0x17   :  { %8 = vsyncpa [#allocation3], 0  ;;  %v1707_v15 = vld [vmem:[%s2059_s0 + $0xd0] sm:$0xff]  ;;  %v1585_v16 = vld [vmem:[%s2061_s2 + $0x20] sm:$0xff]   ;;  %v209_v46 = vlaneseq }
  0x18   :  { %1453 = vmatprep.subr.bf16.mxu0 %v1585_v16  ;;  %v21_v17 = vld [vmem:[%s2059_s0 + $0x28] sm:$0xff]  ;;  %v1586_v18 = vld [vmem:[%s2061_s2 + $0x18] sm:$0xff]   ;;  %v1587_v19 = vld [vmem:[%s2061_s2 + $0x10] sm:$0xff]  }
  0x19   :  { %1553 = vset.pattern.permute.xlu1 %v1620_v2  ;;  %1454 = vmatpush3.bf16.msra.mxu0 %v1585_v16  ;;  %v23_v20 = vld [vmem:[%s2059_s0 + $0x38] sm:$0xff]  ;;  %v1588_v21 = vld [vmem:[%s2061_s2 + $0x8] sm:$0xff]   ;;  %v1589_v22 = vld [vmem:[%s2061_s2] sm:$0xff]   ;;  %v1818_v49 = vshrl.u32 %v209_v46, 7 }
  0x1a   :  { %350 = vperm.xlu0 %1550, %v1707_v15   ;;  %262 = vperm.xlu1 %1553, %v20_v12   ;;  %v24_v23 = vld [vmem:[%s2059_s0 + $0x40] sm:$0xff]  ;;  %v25_v24 = vld [vmem:[%s2059_s0 + $0x48] sm:$0xff]  ;;  %v27_v26 = vld [vmem:[%s2059_s0 + $0x58] sm:$0xff] }
  0x1b   :  { %1455 = vmatprep.subr.bf16.mxu0 %v1586_v18  ;;  %v29_v25 = vld [vmem:[%s2059_s0 + $0x68] sm:$0xff]  ;;  %v28_v28 = vld [vmem:[%s2059_s0 + $0x60] sm:$0xff]  ;;  %v31_v31 = vld [vmem:[%s2059_s0 + $0x78] sm:$0xff]  ;;  %v375_v52 = vsub.s32 1, %v1818_v49  ;;  %v211_v54 = vsub.s32 0, %v1818_v49  ;;  %v443_v63 = vsub.s32 2, %v1818_v49 }
  0x1c   :  { %v33_v27 = vld [vmem:[%s2059_s0 + $0x88] sm:$0xff]  ;;  %v32_v33 = vld [vmem:[%s2059_s0 + $0x80] sm:$0xff]  ;;  %v46_v34 = vld [vmem:[%s2059_s0 + $0xf0] sm:$0xff] }
  0x1d   :  { %1456 = vmatpush3.bf16.msra.mxu0 %v1586_v18  ;;  %v37_v29 = vld [vmem:[%s2059_s0 + $0xa8] sm:$0xff]  ;;  %v35_v35 = vld [vmem:[%s2059_s0 + $0x98] sm:$0xff]  ;;  %v36_v36 = vld [vmem:[%s2059_s0 + $0xa0] sm:$0xff] }
  0x1e   :  { %1575 = vset.pattern.permute.xlu0 %v1621_v7  ;;  %266 = vperm.xlu1 %1553, %v21_v17   ;;  %v41_v30 = vld [vmem:[%s2059_s0 + $0xc8] sm:$0xff]  ;;  %v39_v39 = vld [vmem:[%s2059_s0 + $0xb8] sm:$0xff]  ;;  %v40_v45 = vld [vmem:[%s2059_s0 + $0xc0] sm:$0xff] }
  0x1f   :  { %51 = vperm.xlu0 %1575, %v16_v1   ;;  %1457 = vmatprep.subr.bf16.mxu0 %v1587_v19  ;;  %v1779_v32 = vld [vmem:[%s2059_s0 + $0xe8] sm:$0xff]  ;;  %v1827_v53 = vld [vmem:[%s2060_s1] sm:$0xff]  ;;  %v43_v58 = vld [vmem:[%s2059_s0 + $0xd8] sm:$0xff] }
  0x20   :  { %v1833_v57 = vrot.slane %v1827_v53, %v375_v52  ;;  %v1839_v59 = vrot.slane %v1827_v53, %v211_v54  ;;  %v1849_v9 = vrot.slane %v1827_v53, %v443_v63  ;;  %v44_v18 = vld [vmem:[%s2059_s0 + $0xe0] sm:$0xff] }
  0x21   :  { %1458 = vmatpush3.bf16.msra.mxu0 %v1587_v19 }
  0x22   :  { %1554 = vset.pattern.permute.xlu1 %v1621_v7  ;;  %1459 = vmatprep.subr.bf16.mxu0 %v1588_v21 }
  0x23   :  { %56 = vperm.xlu0 %1575, %v17_v4   ;;  %86 = vperm.xlu1 %1554, %v23_v20  }
  0x25   :  { %1460 = vmatpush3.bf16.msra.mxu0 %v1588_v21 }
  0x26   :  { %1461 = vmatprep.subr.bf16.mxu0 %v1589_v22 }
  0x27   :  { %61 = vperm.xlu0 %1575, %v18_v0   ;;  %1555 = vset.pattern.permute.xlu1 %v1620_v2 }
  0x28   :  { %274 = vperm.xlu1 %1555, %v23_v20  }
  0x29   :  { %1462 = vmatpush3.bf16.msra.mxu0 %v1589_v22 }
  0x2b   :  { %76 = vperm.xlu0 %1575, %v21_v17  }
  0x2c   :  { %1556 = vset.pattern.permute.xlu1 %v1621_v7 }
  0x2d   :  { %91 = vperm.xlu1 %1556, %v24_v23  }
  0x2f   :  { %81 = vperm.xlu0 %1575, %v1656_v3  }
  0x31   :  { %1557 = vset.pattern.permute.xlu1 %v1620_v2 }
  0x32   :  { %278 = vperm.xlu1 %1557, %v24_v23  }
  0x33   :  { %96 = vperm.xlu0 %1575, %v25_v24  }
  0x36   :  { %282 = vperm.xlu1 %1557, %v25_v24  }
  0x37   :  { %101 = vperm.xlu0 %1575, %v1665_v5  }
  0x3a   :  { %1558 = vset.pattern.permute.xlu1 %v1621_v7 }
  0x3b   :  { %116 = vperm.xlu0 %1575, %v29_v25   ;;  %106 = vperm.xlu1 %1558, %v27_v26  }
  0x3f   :  { %121 = vperm.xlu0 %1575, %v1675_v8   ;;  %1559 = vset.pattern.permute.xlu1 %v1620_v2 }
  0x40   :  { %290 = vperm.xlu1 %1559, %v27_v26  }
  0x43   :  { %136 = vperm.xlu0 %1575, %v33_v27  }
  0x44   :  { %1560 = vset.pattern.permute.xlu1 %v1621_v7 }
  0x45   :  { %111 = vperm.xlu1 %1560, %v28_v28  }
  0x47   :  { %141 = vperm.xlu0 %1575, %v1683_v10  }
  0x49   :  { %1561 = vset.pattern.permute.xlu1 %v1620_v2 }
  0x4a   :  { %294 = vperm.xlu1 %1561, %v28_v28  }
  0x4b   :  { %156 = vperm.xlu0 %1575, %v37_v29  }
  0x4e   :  { %298 = vperm.xlu1 %1561, %v29_v25  }
  0x4f   :  { %161 = vperm.xlu0 %1575, %v1696_v13  }
  0x52   :  { %1562 = vset.pattern.permute.xlu1 %v1621_v7 }
  0x53   :  { %176 = vperm.xlu0 %1575, %v41_v30   ;;  %126 = vperm.xlu1 %1562, %v31_v31  }
  0x57   :  { %181 = vperm.xlu0 %1575, %v1707_v15   ;;  %1563 = vset.pattern.permute.xlu1 %v1620_v2 }
  0x58   :  { %306 = vperm.xlu1 %1563, %v31_v31  }
  0x5b   :  { %196 = vperm.xlu0 %1575, %v1779_v32  }
  0x5c   :  { %1564 = vset.pattern.permute.xlu1 %v1621_v7 }
  0x5d   :  { %131 = vperm.xlu1 %1564, %v32_v33  }
  0x5f   :  { %201 = vperm.xlu0 %1575, %v46_v34  }
  0x61   :  { %1565 = vset.pattern.permute.xlu1 %v1620_v2 }
  0x62   :  { %310 = vperm.xlu1 %1565, %v32_v33  }
  0x63   :  { %1580 = vset.pattern.permute.xlu0 %v1620_v2 }
  0x64   :  { %366 = vperm.xlu0 %1580, %v46_v34  }
  0x66   :  { %314 = vperm.xlu1 %1565, %v33_v27  }
  0x6a   :  { %1566 = vset.pattern.permute.xlu1 %v1621_v7 }
  0x6b   :  { %146 = vperm.xlu1 %1566, %v35_v35  }
  0x6f   :  { %1567 = vset.pattern.permute.xlu1 %v1620_v2 }
  0x70   :  { %322 = vperm.xlu1 %1567, %v35_v35  }
  0x74   :  { %1568 = vset.pattern.permute.xlu1 %v1621_v7 }
  0x75   :  { %151 = vperm.xlu1 %1568, %v36_v36  }
  0x79   :  { %1569 = vset.pattern.permute.xlu1 %v1620_v2 }
  0x7a   :  { %326 = vperm.xlu1 %1569, %v36_v36  }
  0x7d   :  { %v247_v37 = vpop.permute.xlu1 %246  ;;  %v255_v38 = vpop.permute.xlu0 %254 }
  0x7e   :  { %330 = vperm.xlu1 %1569, %v37_v29   ;;  %v377_v62 = vmul.f32 %v1833_v57, %v247_v37  ;;  %v379_v13 = vmul.f32 %v1833_v57, %v255_v38 }
  0x81   :  { %v251_v40 = vpop.permute.xlu1 %250  ;;  %v1804_v41 = vpop.permute.xlu0 %270 }
  0x82   :  { %1570 = vset.pattern.permute.xlu1 %v1621_v7  ;;  %v378_v8 = vmul.f32 %v1833_v57, %v251_v40  ;;  %v383_v35 = vmul.f32 %v1833_v57, %v1804_v41 }
  0x83   :  { %166 = vperm.xlu1 %1570, %v39_v39  }
  0x85   :  { %v1807_v42 = vpop.permute.xlu0 %286 }
  0x86   :  { %v67_v43 = vpop.permute.xlu1 %66 }
  0x87   :  { %1571 = vset.pattern.permute.xlu1 %v1620_v2  ;;  %v216_v4 = vmul.f32 %v1839_v59, %v67_v43 }
  0x88   :  { %338 = vperm.xlu1 %1571, %v39_v39  }
  0x89   :  { %v1810_v44 = vpop.permute.xlu0 %302 }
  0x8b   :  { %v259_v47 = vpop.permute.xlu1 %258 }
  0x8c   :  { %1572 = vset.pattern.permute.xlu1 %v1621_v7  ;;  %v380_v1 = vmul.f32 %v1833_v57, %v259_v47 }
  0x8d   :  { %171 = vperm.xlu1 %1572, %v40_v45   ;;  %v1816_v48 = vpop.permute.xlu0 %318 }
  0x8e   :  { %v412_v11 = vadd.f32 %v380_v1, %v216_v4  ;;  %v47_v4 = vld [vmem:[%s2059_s0 + $0xf8] sm:$0xff] }
  0x90   :  { %v72_v50 = vpop.permute.xlu1 %71  ;;  %v448_v22 = vadd.f32 %v1849_v9, %v412_v11 }
  0x91   :  { %1573 = vset.pattern.permute.xlu1 %v1620_v2  ;;  %v1821_v51 = vpop.permute.xlu0 %334  ;;  %v217_v16 = vmul.f32 %v1839_v59, %v72_v50 }
  0x92   :  { %342 = vperm.xlu1 %1573, %v40_v45   ;;  %v480_v36 = vmax.f32 %v448_v22, 0.0 }
  0x95   :  { %v263_v55 = vpop.permute.xlu1 %262  ;;  %v1830_v56 = vpop.permute.xlu0 %350 }
  0x96   :  { %346 = vperm.xlu1 %1573, %v41_v30   ;;  %v381_v12 = vmul.f32 %v1833_v57, %v263_v55 }
  0x98   :  { %v413_v23 = vadd.f32 %v381_v12, %v217_v16  ;;  %v387_v12 = vmul.f32 %v1833_v57, %v1807_v42 }
  0x99   :  { %v267_v60 = vpop.permute.xlu1 %266 }
  0x9a   :  { %v52_v61 = vpop.permute.xlu0 %51  ;;  %1574 = vset.pattern.permute.xlu1 %v1621_v7  ;;  %v382_v28 = vmul.f32 %v1833_v57, %v267_v60  ;;  %v449_v38 = vadd.f32 %v1849_v9, %v413_v23 }
  0x9b   :  { %v213_v0 = vmul.f32 %v1839_v59, %v52_v61  ;;  %186 = vperm.xlu1 %1574, %v43_v58  }
  0x9c   :  { %v481_v52 = vmax.f32 %v449_v38, 0.0 }
  0x9d   :  { %v409_v3 = vadd.f32 %v377_v62, %v213_v0 }
  0x9e   :  { %v57_v5 = vpop.permute.xlu0 %56  ;;  %v87_v6 = vpop.permute.xlu1 %86 }
  0x9f   :  { %v214_v10 = vmul.f32 %v1839_v59, %v57_v5  ;;  %1576 = vset.pattern.permute.xlu1 %v1620_v2  ;;  %v445_v15 = vadd.f32 %v1849_v9, %v409_v3  ;;  %v220_v30 = vmul.f32 %v1839_v59, %v87_v6 }
  0xa0   :  { %354 = vperm.xlu1 %1576, %v43_v58  }
  0xa1   :  { %v410_v14 = vadd.f32 %v378_v8, %v214_v10  ;;  %v477_v26 = vmax.f32 %v445_v15, 0.0 }
  0xa2   :  { %v62_v17 = vpop.permute.xlu0 %61 }
  0xa3   :  { %v215_v19 = vmul.f32 %v1839_v59, %v62_v17  ;;  %v275_v20 = vpop.permute.xlu1 %274  ;;  %v446_v21 = vadd.f32 %v1849_v9, %v410_v14 }
  0xa4   :  { %1577 = vset.pattern.permute.xlu1 %v1621_v7  ;;  %v384_v25 = vmul.f32 %v1833_v57, %v275_v20 }
  0xa5   :  { %v411_v24 = vadd.f32 %v379_v13, %v215_v19  ;;  %191 = vperm.xlu1 %1577, %v44_v18   ;;  %v478_v27 = vmax.f32 %v446_v21, 0.0 }
  0xa6   :  { %v77_v29 = vpop.permute.xlu0 %76  ;;  %v416_v40 = vadd.f32 %v384_v25, %v220_v30  ;;  %v1590_v25 = vld [vmem:[%s2061_s2 + $0x78] sm:$0xff]   ;;  %v1592_v30 = vld [vmem:[%s2061_s2 + $0x68] sm:$0xff]  }
  0xa7   :  { %v447_v31 = vadd.f32 %v1849_v9, %v411_v24  ;;  %v218_v33 = vmul.f32 %v1839_v59, %v77_v29  ;;  %v509_v34 = vpack.c.bf16 %v478_v27, %v477_v26  ;;  %1495 = vmatprep.subr.bf16.mxu1 %v1590_v25 }
  0xa8   :  { %v92_v37 = vpop.permute.xlu1 %91  ;;  %v452_v41 = vadd.f32 %v1849_v9, %v416_v40  ;;  %1496 = vmatpush3.bf16.msra.mxu1 %v1590_v25 }
  0xa9   :  { %v479_v39 = vmax.f32 %v447_v31, 0.0  ;;  %v414_v43 = vadd.f32 %v382_v28, %v218_v33  ;;  %1578 = vset.pattern.permute.xlu1 %v1620_v2  ;;  %1463 = vmatprep.mubr.bf16.mxu0 %v509_v34  ;;  %v221_v60 = vmul.f32 %v1839_v59, %v92_v37 }
  0xaa   :  { %v82_v45 = vpop.permute.xlu0 %81  ;;  %358 = vperm.xlu1 %1578, %v44_v18   ;;  %v484_v5 = vmax.f32 %v452_v41, 0.0 }
  0xab   :  { %v450_v46 = vadd.f32 %v1849_v9, %v414_v43  ;;  %v219_v47 = vmul.f32 %v1839_v59, %v82_v45  ;;  %v510_v50 = vpack.c.bf16 %v480_v36, %v479_v39  ;;  %v1593_v36 = vld [vmem:[%s2061_s2 + $0x60] sm:$0xff]   ;;  %v1594_v45 = vld [vmem:[%s2061_s2 + $0x58] sm:$0xff]  }
  0xad   :  { %v482_v54 = vmax.f32 %v450_v46, 0.0  ;;  %v415_v55 = vadd.f32 %v383_v35, %v219_v47  ;;  %1464 = vmatmul.mubr.bf16.vlgmr.msra.gmra.mxu0 %v510_v50  ;;  %v279_v58 = vpop.permute.xlu1 %278 }
  0xae   :  { %v385_v61 = vmul.f32 %v1833_v57, %v279_v58  ;;  %v97_v62 = vpop.permute.xlu0 %96  ;;  %362 = vperm.xlu1 %1578, %v1779_v32  }
  0xaf   :  { %v451_v63 = vadd.f32 %v1849_v9, %v415_v55  ;;  %v511_v0 = vpack.c.bf16 %v482_v54, %v481_v52  ;;  %v222_v3 = vmul.f32 %v1839_v59, %v97_v62  ;;  %v391_v52 = vmul.f32 %v1833_v57, %v1810_v44 }
  0xb0   :  { %v417_v1 = vadd.f32 %v385_v61, %v221_v60 }
  0xb1   :  { %v483_v6 = vmax.f32 %v451_v63, 0.0  ;;  %1467 = vmatprep.mubr.bf16.mxu0 %v511_v0  ;;  %v283_v8 = vpop.permute.xlu1 %282 }
  0xb2   :  { %v386_v10 = vmul.f32 %v1833_v57, %v283_v8  ;;  %1579 = vset.pattern.permute.xlu1 %v1621_v7  ;;  %v102_v11 = vpop.permute.xlu0 %101  ;;  %v453_v13 = vadd.f32 %v1849_v9, %v417_v1 }
  0xb3   :  { %206 = vperm.xlu1 %1579, %v47_v4   ;;  %v512_v32 = vpack.c.bf16 %v484_v5, %v483_v6  ;;  %v223_v15 = vmul.f32 %v1839_v59, %v102_v11 }
  0xb4   :  { %v418_v14 = vadd.f32 %v386_v10, %v222_v3  ;;  %v485_v18 = vmax.f32 %v453_v13, 0.0 }
  0xb5   :  { %1468 = vmatmul.mubr.bf16.gmra.mxu0 %v512_v32  ;;  %v419_v7 = vadd.f32 %v387_v12, %v223_v15 }
  0xb6   :  { %v454_v16 = vadd.f32 %v1849_v9, %v418_v14  ;;  %v107_v17 = vpop.permute.xlu1 %106  ;;  %v117_v37 = vpop.permute.xlu0 %116 }
  0xb7   :  { %1581 = vset.pattern.permute.xlu1 %v1620_v2  ;;  %v455_v22 = vadd.f32 %v1849_v9, %v419_v7  ;;  %v224_v42 = vmul.f32 %v1839_v59, %v107_v17  ;;  %v1591_v2 = vld [vmem:[%s2061_s2 + $0x70] sm:$0xff]   ;;  %v226_v38 = vmul.f32 %v1839_v59, %v117_v37 }
  0xb8   :  { %v486_v19 = vmax.f32 %v454_v16, 0.0  ;;  %370 = vperm.xlu1 %1581, %v47_v4   ;;  %1497 = vmatprep.subr.bf16.mxu1 %v1591_v2 }
  0xb9   :  { %v487_v26 = vmax.f32 %v455_v22, 0.0  ;;  %1498 = vmatpush3.bf16.msra.mxu1 %v1591_v2 }
  0xba   :  { %v513_v20 = vpack.c.bf16 %v486_v19, %v485_v18  ;;  %1499 = vmatprep.subr.bf16.mxu1 %v1592_v30  ;;  %v122_v50 = vpop.permute.xlu0 %121 }
  0xbb   :  { %v291_v21 = vpop.permute.xlu1 %290  ;;  %v227_v41 = vmul.f32 %v1839_v59, %v122_v50 }
  0xbc   :  { %v388_v23 = vmul.f32 %v1833_v57, %v291_v21  ;;  %1471 = vmatprep.mubr.bf16.mxu0 %v513_v20  ;;  %v395_v20 = vmul.f32 %v1833_v57, %v1816_v48 }
  0xbd   :  { %1500 = vmatpush3.bf16.msra.mxu1 %v1592_v30  ;;  %v423_v61 = vadd.f32 %v391_v52, %v227_v41 }
  0xbe   :  { %v420_v24 = vadd.f32 %v388_v23, %v224_v42  ;;  %1501 = vmatprep.subr.bf16.mxu1 %v1593_v36  ;;  %v137_v13 = vpop.permute.xlu0 %136 }
  0xbf   :  { %v459_v3 = vadd.f32 %v1849_v9, %v423_v61  ;;  %v230_v14 = vmul.f32 %v1839_v59, %v137_v13 }
  0xc0   :  { %v456_v27 = vadd.f32 %v1849_v9, %v420_v24  ;;  %v112_v28 = vpop.permute.xlu1 %111 }
  0xc1   :  { %v225_v34 = vmul.f32 %v1839_v59, %v112_v28  ;;  %1502 = vmatpush3.bf16.msra.mxu1 %v1593_v36  ;;  %v491_v6 = vmax.f32 %v459_v3, 0.0 }
  0xc2   :  { %v488_v29 = vmax.f32 %v456_v27, 0.0  ;;  %1503 = vmatprep.subr.bf16.mxu1 %v1594_v45  ;;  %v142_v7 = vpop.permute.xlu0 %141 }
  0xc3   :  { %v231_v21 = vmul.f32 %v1839_v59, %v142_v7 }
  0xc4   :  { %v514_v31 = vpack.c.bf16 %v488_v29, %v487_v26  ;;  %v1595_v29 = vld [vmem:[%s2061_s2 + $0x50] sm:$0xff]  }
  0xc5   :  { %v295_v33 = vpop.permute.xlu1 %294  ;;  %1504 = vmatpush3.bf16.msra.mxu1 %v1594_v45  ;;  %v427_v25 = vadd.f32 %v395_v20, %v231_v21 }
  0xc6   :  { %v389_v35 = vmul.f32 %v1833_v57, %v295_v33  ;;  %1472 = vmatmul.mubr.bf16.gmra.mxu0 %v514_v31  ;;  %1505 = vmatprep.subr.bf16.mxu1 %v1595_v29  ;;  %v157_v45 = vpop.permute.xlu0 %156 }
  0xc7   :  { %v463_v48 = vadd.f32 %v1849_v9, %v427_v25  ;;  %v234_v50 = vmul.f32 %v1839_v59, %v157_v45 }
  0xc8   :  { %v421_v39 = vadd.f32 %v389_v35, %v225_v34  ;;  %v1596_v34 = vld [vmem:[%s2061_s2 + $0x48] sm:$0xff]  }
  0xc9   :  { %v299_v40 = vpop.permute.xlu1 %298  ;;  %1506 = vmatpush3.bf16.msra.mxu1 %v1595_v29  ;;  %v495_v35 = vmax.f32 %v463_v48, 0.0 }
  0xca   :  { %v390_v43 = vmul.f32 %v1833_v57, %v299_v40  ;;  %v457_v46 = vadd.f32 %v1849_v9, %v421_v39  ;;  %1507 = vmatprep.subr.bf16.mxu1 %v1596_v34  ;;  %v1597_v39 = vld [vmem:[%s2061_s2 + $0x40] sm:$0xff]   ;;  %s1622_s2 = smov [#allocation2]  }
  0xcb   :  { %s1197_s27 = sshll.u32 %s1622_s2, 4  ;;  %s1198_s27 = int_to_ptr.vmem [resolvable:$true] %s1197_s27 }
  0xcc   :  { %v422_v47 = vadd.f32 %v390_v43, %v226_v38  ;;  %v489_v58 = vmax.f32 %v457_v46, 0.0  ;;  %s1598_s28 = scalar_lea.vmem %s1198_s27, 2048  ;;  %p1603_p1 = scmp.lt.s32.totalorder %s1198_s27, %s1198_s27 }
  0xcd   :  { %1508 = vmatpush3.bf16.msra.mxu1 %v1596_v34  ;;  %p1599_p0 = scmp.ne.s32.totalorder %s1198_s27, %s1598_s28  ;;  %p1604_p2 = scmp.lt.s32.totalorder %s1598_s28, %s1598_s28 }
  0xce   :  { %v458_v54 = vadd.f32 %v1849_v9, %v422_v47  ;;  %v127_v55 = vpop.permute.xlu1 %126  ;;  %1509 = vmatprep.subr.bf16.mxu1 %v1597_v39 }
  0xcf   :  { %v228_v0 = vmul.f32 %v1839_v59, %v127_v55  ;;  %v162_v55 = vpop.permute.xlu0 %161  ;;  %p1605_p3 = por %p1604_p2, %p1603_p1 }
  0xd0   :  { %v490_v60 = vmax.f32 %v458_v54, 0.0 }
  0xd1   :  { %1510 = vmatpush3.bf16.msra.mxu1 %v1597_v39  ;;  %p1606_p4 = pnand %p1605_p3, %p1599_p0 }
  0xd2   :  { %v515_v62 = vpack.c.bf16 %v490_v60, %v489_v58  ;;  %v399_v58 = vmul.f32 %v1833_v57, %v1821_v51  ;;  %v235_v60 = vmul.f32 %v1839_v59, %v162_v55 }
  0xd3   :  { %v307_v63 = vpop.permute.xlu1 %306  ;;  %v177_v13 = vpop.permute.xlu0 %176 }
  0xd4   :  { %v392_v1 = vmul.f32 %v1833_v57, %v307_v63  ;;  %1475 = vmatprep.mubr.bf16.mxu0 %v515_v62 }
  0xd6   :  { %v424_v44 = vadd.f32 %v392_v1, %v228_v0  ;;  %v431_v1 = vadd.f32 %v399_v58, %v235_v60 }
  0xd7   :  { %v182_v20 = vpop.permute.xlu0 %181 }
  0xd8   :  { %v460_v4 = vadd.f32 %v1849_v9, %v424_v44  ;;  %v132_v5 = vpop.permute.xlu1 %131 }
  0xd9   :  { %v229_v32 = vmul.f32 %v1839_v59, %v132_v5 }
  0xda   :  { %v492_v8 = vmax.f32 %v460_v4, 0.0 }
  0xdb   :  { %v197_v34 = vpop.permute.xlu0 %196 }
  0xdc   :  { %v516_v10 = vpack.c.bf16 %v492_v8, %v491_v6  ;;  %v467_v6 = vadd.f32 %v1849_v9, %v431_v1 }
  0xdd   :  { %v311_v11 = vpop.permute.xlu1 %310 }
  0xde   :  { %v393_v12 = vmul.f32 %v1833_v57, %v311_v11  ;;  %1476 = vmatmul.mubr.bf16.gmra.mxu0 %v516_v10  ;;  %v499_v11 = vmax.f32 %v467_v6, 0.0 }
  0xdf   :  { %v202_v39 = vpop.permute.xlu0 %201 }
  0xe0   :  { %v425_v15 = vadd.f32 %v393_v12, %v229_v32  ;;  %v243_v58 = vmul.f32 %v1839_v59, %v202_v39 }
  0xe1   :  { %v315_v16 = vpop.permute.xlu1 %314 }
  0xe2   :  { %v394_v17 = vmul.f32 %v1833_v57, %v315_v16  ;;  %v461_v18 = vadd.f32 %v1849_v9, %v425_v15 }
  0xe4   :  { %v426_v19 = vadd.f32 %v394_v17, %v230_v14  ;;  %v493_v23 = vmax.f32 %v461_v18, 0.0 }
  0xe6   :  { %v462_v22 = vadd.f32 %v1849_v9, %v426_v19  ;;  %v147_v42 = vpop.permute.xlu1 %146  ;;  %v238_v19 = vmul.f32 %v1839_v59, %v177_v13 }
  0xe7   :  { %v232_v27 = vmul.f32 %v1839_v59, %v147_v42  ;;  %v403_v42 = vmul.f32 %v1833_v57, %v1830_v56 }
  0xe8   :  { %v494_v24 = vmax.f32 %v462_v22, 0.0 }
  0xea   :  { %v517_v2 = vpack.c.bf16 %v494_v24, %v493_v23  ;;  %v239_v23 = vmul.f32 %v1839_v59, %v182_v20 }
  0xeb   :  { %v323_v26 = vpop.permute.xlu1 %322 }
  0xec   :  { %v396_v28 = vmul.f32 %v1833_v57, %v323_v26  ;;  %1479 = vmatprep.mubr.bf16.mxu0 %v517_v2 }
  0xee   :  { %v428_v30 = vadd.f32 %v396_v28, %v232_v27  ;;  %v435_v27 = vadd.f32 %v403_v42, %v239_v23 }
  0xf0   :  { %v464_v31 = vadd.f32 %v1849_v9, %v428_v30  ;;  %v152_v33 = vpop.permute.xlu1 %151 }
  0xf1   :  { %v233_v40 = vmul.f32 %v1839_v59, %v152_v33 }
  0xf2   :  { %v496_v36 = vmax.f32 %v464_v31, 0.0  ;;  %v471_v31 = vadd.f32 %v1849_v9, %v435_v27 }
  0xf4   :  { %v518_v37 = vpack.c.bf16 %v496_v36, %v495_v35  ;;  %v503_v36 = vmax.f32 %v471_v31, 0.0 }
  0xf5   :  { %v327_v38 = vpop.permute.xlu1 %326 }
  0xf6   :  { %v397_v43 = vmul.f32 %v1833_v57, %v327_v38  ;;  %1480 = vmatmul.mubr.bf16.gmra.mxu0 %v518_v37 }
  0xf8   :  { %v429_v46 = vadd.f32 %v397_v43, %v233_v40 }
  0xf9   :  { %v331_v47 = vpop.permute.xlu1 %330 }
  0xfa   :  { %v398_v52 = vmul.f32 %v1833_v57, %v331_v47  ;;  %v465_v41 = vadd.f32 %v1849_v9, %v429_v46 }
  0xfc   :  { %v430_v54 = vadd.f32 %v398_v52, %v234_v50  ;;  %v497_v63 = vmax.f32 %v465_v41, 0.0  ;;  %v242_v50 = vmul.f32 %v1839_v59, %v197_v34  ;;  %v367_v41 = vpop.permute.xlu0 %366 }
  0xfd   :  { %v407_v60 = vmul.f32 %v1833_v57, %v367_v41 }
  0xfe   :  { %v466_v61 = vadd.f32 %v1849_v9, %v430_v54  ;;  %v167_v62 = vpop.permute.xlu1 %166 }
  0xff   :  { %v236_v4 = vmul.f32 %v1839_v59, %v167_v62  ;;  %v439_v1 = vadd.f32 %v407_v60, %v243_v58 }
 0x100   :  { %v498_v0 = vmax.f32 %v466_v61, 0.0 }
 0x101   :  { %v475_v6 = vadd.f32 %v1849_v9, %v439_v1 }
 0x102   :  { %v519_v3 = vpack.c.bf16 %v498_v0, %v497_v63 }
 0x103   :  { %v339_v44 = vpop.permute.xlu1 %338 }
 0x104   :  { %v400_v5 = vmul.f32 %v1833_v57, %v339_v44  ;;  %1483 = vmatprep.mubr.bf16.mxu0 %v519_v3 }
 0x106   :  { %v432_v8 = vadd.f32 %v400_v5, %v236_v4 }
 0x108   :  { %v468_v51 = vadd.f32 %v1849_v9, %v432_v8  ;;  %v172_v10 = vpop.permute.xlu1 %171 }
 0x109   :  { %v237_v15 = vmul.f32 %v1839_v59, %v172_v10  ;;  %v507_v10 = vmax.f32 %v475_v6, 0.0 }
 0x10a   :  { %v500_v32 = vmax.f32 %v468_v51, 0.0 }
 0x10c   :  { %v520_v12 = vpack.c.bf16 %v500_v32, %v499_v11 }
 0x10d   :  { %v343_v14 = vpop.permute.xlu1 %342 }
 0x10e   :  { %v401_v16 = vmul.f32 %v1833_v57, %v343_v14  ;;  %1484 = vmatmul.mubr.bf16.gmra.mxu0 %v520_v12  ;;  %v543_v12 = vsub.s32 3, %v1818_v49 }
 0x110   :  { %v433_v17 = vadd.f32 %v401_v16, %v237_v15  ;;  %v1986_v14 = vrot.slane %v1827_v53, %v543_v12 }
 0x111   :  { %v347_v18 = vpop.permute.xlu1 %346 }
 0x112   :  { %v402_v7 = vmul.f32 %v1833_v57, %v347_v18  ;;  %v469_v21 = vadd.f32 %v1849_v9, %v433_v17 }
 0x114   :  { %v434_v22 = vadd.f32 %v402_v7, %v238_v19  ;;  %v501_v2 = vmax.f32 %v469_v21, 0.0 }
 0x116   :  { %v470_v24 = vadd.f32 %v1849_v9, %v434_v22  ;;  %v187_v25 = vpop.permute.xlu1 %186 }
 0x117   :  { %v240_v48 = vmul.f32 %v1839_v59, %v187_v25 }
 0x118   :  { %v502_v26 = vmax.f32 %v470_v24, 0.0 }
 0x11a   :  { %v521_v28 = vpack.c.bf16 %v502_v26, %v501_v2 }
 0x11b   :  { %v355_v29 = vpop.permute.xlu1 %354 }
 0x11c   :  { %v404_v30 = vmul.f32 %v1833_v57, %v355_v29  ;;  %1487 = vmatprep.mubr.bf16.mxu0 %v521_v28 }
 0x11e   :  { %v436_v33 = vadd.f32 %v404_v30, %v240_v48 }
 0x120   :  { %v472_v56 = vadd.f32 %v1849_v9, %v436_v33  ;;  %v192_v35 = vpop.permute.xlu1 %191 }
 0x121   :  { %v241_v43 = vmul.f32 %v1839_v59, %v192_v35 }
 0x122   :  { %v504_v37 = vmax.f32 %v472_v56, 0.0 }
 0x124   :  { %v522_v38 = vpack.c.bf16 %v504_v37, %v503_v36 }
 0x125   :  { %v359_v40 = vpop.permute.xlu1 %358 }
 0x126   :  { %v405_v45 = vmul.f32 %v1833_v57, %v359_v40  ;;  %1488 = vmatmul.mubr.bf16.gmra.mxu0 %v522_v38 }
 0x128   :  { %v437_v46 = vadd.f32 %v405_v45, %v241_v43 }
 0x129   :  { %v363_v47 = vpop.permute.xlu1 %362 }
 0x12a   :  { %v406_v52 = vmul.f32 %v1833_v57, %v363_v47  ;;  %v473_v54 = vadd.f32 %v1849_v9, %v437_v46 }
 0x12c   :  { %v438_v55 = vadd.f32 %v406_v52, %v242_v50  ;;  %v505_v63 = vmax.f32 %v473_v54, 0.0 }
 0x12e   :  { %v474_v61 = vadd.f32 %v1849_v9, %v438_v55  ;;  %v207_v62 = vpop.permute.xlu1 %206 }
 0x12f   :  { %v244_v4 = vmul.f32 %v1839_v59, %v207_v62 }
 0x130   :  { %v506_v0 = vmax.f32 %v474_v61, 0.0 }
 0x132   :  { %v523_v3 = vpack.c.bf16 %v506_v0, %v505_v63 }
 0x133   :  { %v371_v44 = vpop.permute.xlu1 %370 }
 0x134   :  { %v408_v5 = vmul.f32 %v1833_v57, %v371_v44  ;;  %1491 = vmatprep.mubr.bf16.mxu0 %v523_v3 }
 0x136   :  { %v440_v8 = vadd.f32 %v408_v5, %v244_v4 }
 0x138   :  { %v476_v51 = vadd.f32 %v1849_v9, %v440_v8 }
 0x13a   :  { %v508_v11 = vmax.f32 %v476_v51, 0.0 }
 0x13c   :  { %v524_v32 = vpack.c.bf16 %v508_v11, %v507_v10 }
 0x13e   :  { %1492 = vmatmul.mubr.bf16.gmra.mxu0 %v524_v32 }
 0x16d   :  { %v1465_v13 = vpop.f32.mrf.mxu0 }
 0x16e   :  { %v636_v17 = vadd.f32 %v1465_v13, %v1986_v14 }
 0x16f   :  { %v627_v15 = vpop.f32.mrf.mxu0 }
 0x170   :  { %v628_v57 = vadd.f32 %v627_v15, %v1986_v14  ;;  %v756_v22 = vmax.f32 %v636_v17, 0.0 }
 0x171   :  { %v1466_v59 = vpop.f32.mrf.mxu0 }
 0x172   :  { %v639_v16 = vadd.f32 %v1466_v59, %v1986_v14  ;;  %v754_v20 = vmax.f32 %v628_v57, 0.0 }
 0x173   :  { %v630_v18 = vpop.f32.mrf.mxu0 }
 0x174   :  { %v631_v9 = vadd.f32 %v630_v18, %v1986_v14  ;;  %v757_v19 = vmax.f32 %v639_v16, 0.0 }
 0x175   :  { %v1469_v7 = vpop.f32.mrf.mxu0 }
 0x176   :  { %v755_v21 = vmax.f32 %v631_v9, 0.0  ;;  %v787_v24 = vpack.c.bf16 %v757_v19, %v756_v22  ;;  %v652_v27 = vadd.f32 %v1469_v7, %v1986_v14 }
 0x177   :  { %v643_v42 = vpop.f32.mrf.mxu0 }
 0x178   :  { %v786_v23 = vpack.c.bf16 %v755_v21, %v754_v20  ;;  %v644_v2 = vadd.f32 %v643_v42, %v1986_v14  ;;  %v760_v33 = vmax.f32 %v652_v27, 0.0 }
 0x179   :  { %v1470_v25 = vpop.f32.mrf.mxu0 }
 0x17a   :  { %v655_v26 = vadd.f32 %v1470_v25, %v1986_v14  ;;  %1511 = vmatprep.mubr.bf16.mxu1 %v786_v23  ;;  %v758_v30 = vmax.f32 %v644_v2, 0.0 }
 0x17b   :  { %v646_v28 = vpop.f32.mrf.mxu0  ;;  %1512 = vmatmul.mubr.bf16.vlgmr.msra.gmra.mxu1 %v787_v24 }
 0x17c   :  { %v647_v29 = vadd.f32 %v646_v28, %v1986_v14  ;;  %v761_v48 = vmax.f32 %v655_v26, 0.0 }
 0x17e   :  { %v759_v31 = vmax.f32 %v647_v29, 0.0  ;;  %v789_v56 = vpack.c.bf16 %v761_v48, %v760_v33 }
 0x180   :  { %v788_v34 = vpack.c.bf16 %v759_v31, %v758_v30 }
 0x182   :  { %1515 = vmatprep.mubr.bf16.mxu1 %v788_v34 }
 0x183   :  { %1516 = vmatmul.mubr.bf16.gmra.mxu1 %v789_v56 }
 0x186   :  { %v1473_v35 = vpop.f32.mrf.mxu0 }
 0x187   :  { %v668_v40 = vadd.f32 %v1473_v35, %v1986_v14 }
 0x188   :  { %v659_v36 = vpop.f32.mrf.mxu0 }
 0x189   :  { %v660_v38 = vadd.f32 %v659_v36, %v1986_v14  ;;  %v764_v52 = vmax.f32 %v668_v40, 0.0 }
 0x18a   :  { %v1474_v37 = vpop.f32.mrf.mxu0 }
 0x18b   :  { %v671_v39 = vadd.f32 %v1474_v37, %v1986_v14  ;;  %v762_v47 = vmax.f32 %v660_v38, 0.0 }
 0x18c   :  { %v662_v43 = vpop.f32.mrf.mxu0 }
 0x18d   :  { %v663_v45 = vadd.f32 %v662_v43, %v1986_v14  ;;  %v765_v46 = vmax.f32 %v671_v39, 0.0 }
 0x18f   :  { %v763_v50 = vmax.f32 %v663_v45, 0.0  ;;  %v791_v54 = vpack.c.bf16 %v765_v46, %v764_v52 }
 0x191   :  { %v790_v41 = vpack.c.bf16 %v763_v50, %v762_v47 }
 0x193   :  { %1519 = vmatprep.mubr.bf16.mxu1 %v790_v41 }
 0x194   :  { %1520 = vmatmul.mubr.bf16.gmra.mxu1 %v791_v54 }
 0x19e   :  { %v1477_v55 = vpop.f32.mrf.mxu0 }
 0x19f   :  { %v684_v63 = vadd.f32 %v1477_v55, %v1986_v14 }
 0x1a0   :  { %v675_v58 = vpop.f32.mrf.mxu0 }
 0x1a1   :  { %v676_v61 = vadd.f32 %v675_v58, %v1986_v14  ;;  %v768_v5 = vmax.f32 %v684_v63, 0.0 }
 0x1a2   :  { %v1478_v60 = vpop.f32.mrf.mxu0 }
 0x1a3   :  { %v687_v62 = vadd.f32 %v1478_v60, %v1986_v14  ;;  %v766_v44 = vmax.f32 %v676_v61, 0.0 }
 0x1a4   :  { %v678_v0 = vpop.f32.mrf.mxu0 }
 0x1a5   :  { %v679_v1 = vadd.f32 %v678_v0, %v1986_v14  ;;  %v769_v3 = vmax.f32 %v687_v62, 0.0 }
 0x1a7   :  { %v767_v4 = vmax.f32 %v679_v1, 0.0  ;;  %v793_v8 = vpack.c.bf16 %v769_v3, %v768_v5 }
 0x1a9   :  { %v792_v6 = vpack.c.bf16 %v767_v4, %v766_v44  ;;  %v821_v44 = vsub.s32 4, %v1818_v49 }
 0x1ab   :  { %1523 = vmatprep.mubr.bf16.mxu1 %v792_v6  ;;  %v2022_v5 = vrot.slane %v1827_v53, %v821_v44 }
 0x1ac   :  { %1524 = vmatmul.mubr.bf16.gmra.mxu1 %v793_v8 }
 0x1b6   :  { %v1481_v51 = vpop.f32.mrf.mxu0 }
 0x1b7   :  { %v700_v13 = vadd.f32 %v1481_v51, %v1986_v14 }
 0x1b8   :  { %v691_v10 = vpop.f32.mrf.mxu0 }
 0x1b9   :  { %v692_v32 = vadd.f32 %v691_v10, %v1986_v14  ;;  %v772_v18 = vmax.f32 %v700_v13, 0.0 }
 0x1ba   :  { %v1482_v11 = vpop.f32.mrf.mxu0 }
 0x1bb   :  { %v703_v12 = vadd.f32 %v1482_v11, %v1986_v14  ;;  %v770_v16 = vmax.f32 %v692_v32, 0.0 }
 0x1bc   :  { %v694_v15 = vpop.f32.mrf.mxu0 }
 0x1bd   :  { %v695_v59 = vadd.f32 %v694_v15, %v1986_v14  ;;  %v773_v57 = vmax.f32 %v703_v12, 0.0 }
 0x1bf   :  { %v771_v17 = vmax.f32 %v695_v59, 0.0  ;;  %v795_v19 = vpack.c.bf16 %v773_v57, %v772_v18 }
 0x1c1   :  { %v794_v9 = vpack.c.bf16 %v771_v17, %v770_v16 }
 0x1c3   :  { %1527 = vmatprep.mubr.bf16.mxu1 %v794_v9 }
 0x1c4   :  { %1528 = vmatmul.mubr.bf16.gmra.mxu1 %v795_v19 }
 0x1ce   :  { %v1485_v7 = vpop.f32.mrf.mxu0 }
 0x1cf   :  { %v716_v23 = vadd.f32 %v1485_v7, %v1986_v14 }
 0x1d0   :  { %v707_v20 = vpop.f32.mrf.mxu0 }
 0x1d1   :  { %v708_v22 = vadd.f32 %v707_v20, %v1986_v14  ;;  %v776_v28 = vmax.f32 %v716_v23, 0.0 }
 0x1d2   :  { %v1486_v21 = vpop.f32.mrf.mxu0 }
 0x1d3   :  { %v719_v42 = vadd.f32 %v1486_v21, %v1986_v14  ;;  %v774_v26 = vmax.f32 %v708_v22, 0.0 }
 0x1d4   :  { %v710_v24 = vpop.f32.mrf.mxu0 }
 0x1d5   :  { %v711_v25 = vadd.f32 %v710_v24, %v1986_v14  ;;  %v777_v2 = vmax.f32 %v719_v42, 0.0 }
 0x1d7   :  { %v775_v27 = vmax.f32 %v711_v25, 0.0  ;;  %v797_v48 = vpack.c.bf16 %v777_v2, %v776_v28 }
 0x1d9   :  { %v796_v29 = vpack.c.bf16 %v775_v27, %v774_v26 }
 0x1db   :  { %1531 = vmatprep.mubr.bf16.mxu1 %v796_v29 }
 0x1dc   :  { %1532 = vmatmul.mubr.bf16.gmra.mxu1 %v797_v48 }
 0x1e6   :  { %v1489_v30 = vpop.f32.mrf.mxu0 }
 0x1e7   :  { %v732_v35 = vadd.f32 %v1489_v30, %v1986_v14 }
 0x1e8   :  { %v723_v31 = vpop.f32.mrf.mxu0 }
 0x1e9   :  { %v724_v34 = vadd.f32 %v723_v31, %v1986_v14  ;;  %v780_v43 = vmax.f32 %v732_v35, 0.0 }
 0x1ea   :  { %v1490_v33 = vpop.f32.mrf.mxu0 }
 0x1eb   :  { %v735_v56 = vadd.f32 %v1490_v33, %v1986_v14  ;;  %v778_v39 = vmax.f32 %v724_v34, 0.0 }
 0x1ec   :  { %v726_v36 = vpop.f32.mrf.mxu0 }
 0x1ed   :  { %v727_v37 = vadd.f32 %v726_v36, %v1986_v14  ;;  %v781_v38 = vmax.f32 %v735_v56, 0.0 }
 0x1ef   :  { %v779_v40 = vmax.f32 %v727_v37, 0.0  ;;  %v799_v46 = vpack.c.bf16 %v781_v38, %v780_v43 }
 0x1f1   :  { %v798_v45 = vpack.c.bf16 %v779_v40, %v778_v39 }
 0x1f3   :  { %1535 = vmatprep.mubr.bf16.mxu1 %v798_v45 }
 0x1f4   :  { %1536 = vmatmul.mubr.bf16.gmra.mxu1 %v799_v46 }
 0x1fe   :  { %v1493_v47 = vpop.f32.mrf.mxu0 }
 0x1ff   :  { %v748_v55 = vadd.f32 %v1493_v47, %v1986_v14 }
 0x200   :  { %v739_v50 = vpop.f32.mrf.mxu0 }
 0x201   :  { %v740_v41 = vadd.f32 %v739_v50, %v1986_v14  ;;  %v784_v0 = vmax.f32 %v748_v55, 0.0 }
 0x202   :  { %v1494_v52 = vpop.f32.mrf.mxu0 }
 0x203   :  { %v751_v54 = vadd.f32 %v1494_v52, %v1986_v14  ;;  %v782_v62 = vmax.f32 %v740_v41, 0.0 }
 0x204   :  { %v742_v58 = vpop.f32.mrf.mxu0 }
 0x205   :  { %v743_v60 = vadd.f32 %v742_v58, %v1986_v14  ;;  %v785_v61 = vmax.f32 %v751_v54, 0.0 }
 0x207   :  { %v783_v63 = vmax.f32 %v743_v60, 0.0  ;;  %v801_v3 = vpack.c.bf16 %v785_v61, %v784_v0 }
 0x209   :  { %v800_v1 = vpack.c.bf16 %v783_v63, %v782_v62 }
 0x20b   :  { %1539 = vmatprep.mubr.bf16.mxu1 %v800_v1 }
 0x20c   :  { %1540 = vmatmul.mubr.bf16.gmra.mxu1 %v801_v3 }
 0x23b   :  { %v1513_v4 = vpop.f32.mrf.mxu1 }
 0x23c   :  { %v914_v51 = vadd.f32 %v1513_v4, %v2022_v5 }
 0x23d   :  { %v905_v6 = vpop.f32.mrf.mxu1 }
 0x23e   :  { %v906_v11 = vadd.f32 %v905_v6, %v2022_v5 }
 0x23f   :  { %v1514_v8 = vpop.f32.mrf.mxu1 }
 0x240   :  { %v917_v14 = vadd.f32 %v1514_v8, %v2022_v5 }
 0x241   :  { %v908_v10 = vpop.f32.mrf.mxu1 }
 0x242   :  { %v1312_v32 = vpack.c.bf16 %v917_v14, %v914_v51  ;;  %v909_v12 = vadd.f32 %v908_v10, %v2022_v5 }
 0x243   :  { %v1517_v13 = vpop.f32.mrf.mxu1 }
 0x244   :  { %1384 = vst [vmem:[#allocation2 + $0x8] sm:$0xff] %v1312_v32   ;;  %v1307_v15 = vpack.c.bf16 %v909_v12, %v906_v11  ;;  %v930_v53 = vadd.f32 %v1517_v13, %v2022_v5 }
 0x245   :  { %v921_v49 = vpop.f32.mrf.mxu1 }
 0x246   :  { %1308 = vst [vmem:[#allocation2] sm:$0xff] %v1307_v15   ;;  %v922_v17 = vadd.f32 %v921_v49, %v2022_v5 }
 0x247   :  { %v1518_v59 = vpop.f32.mrf.mxu1 }
 0x248   :  { %v933_v57 = vadd.f32 %v1518_v59, %v2022_v5 }
 0x249   :  { %v924_v16 = vpop.f32.mrf.mxu1 }
 0x24a   :  { %v1322_v18 = vpack.c.bf16 %v933_v57, %v930_v53  ;;  %v925_v9 = vadd.f32 %v924_v16, %v2022_v5 }
 0x24c   :  { %1386 = vst [vmem:[#allocation2 + $0x18] sm:$0xff] %v1322_v18   ;;  %v1317_v19 = vpack.c.bf16 %v925_v9, %v922_v17 }
 0x24e   :  { %1385 = vst [vmem:[#allocation2 + $0x10] sm:$0xff] %v1317_v19  }
 0x254   :  { %v1521_v7 = vpop.f32.mrf.mxu1 }
 0x255   :  { %v946_v22 = vadd.f32 %v1521_v7, %v2022_v5 }
 0x256   :  { %v937_v20 = vpop.f32.mrf.mxu1 }
 0x257   :  { %v938_v24 = vadd.f32 %v937_v20, %v2022_v5 }
 0x258   :  { %v1522_v21 = vpop.f32.mrf.mxu1 }
 0x259   :  { %v949_v42 = vadd.f32 %v1522_v21, %v2022_v5 }
 0x25a   :  { %v940_v23 = vpop.f32.mrf.mxu1 }
 0x25b   :  { %v1332_v25 = vpack.c.bf16 %v949_v42, %v946_v22  ;;  %v941_v2 = vadd.f32 %v940_v23, %v2022_v5 }
 0x25d   :  { %1388 = vst [vmem:[#allocation2 + $0x28] sm:$0xff] %v1332_v25   ;;  %v1327_v26 = vpack.c.bf16 %v941_v2, %v938_v24 }
 0x25f   :  { %1387 = vst [vmem:[#allocation2 + $0x20] sm:$0xff] %v1327_v26  }
 0x26c   :  { %v1525_v27 = vpop.f32.mrf.mxu1 }
 0x26d   :  { %v962_v48 = vadd.f32 %v1525_v27, %v2022_v5 }
 0x26e   :  { %v953_v28 = vpop.f32.mrf.mxu1 }
 0x26f   :  { %v954_v33 = vadd.f32 %v953_v28, %v2022_v5 }
 0x270   :  { %v1526_v29 = vpop.f32.mrf.mxu1 }
 0x271   :  { %v965_v30 = vadd.f32 %v1526_v29, %v2022_v5 }
 0x272   :  { %v956_v31 = vpop.f32.mrf.mxu1 }
 0x273   :  { %v1342_v34 = vpack.c.bf16 %v965_v30, %v962_v48  ;;  %v957_v56 = vadd.f32 %v956_v31, %v2022_v5 }
 0x275   :  { %1390 = vst [vmem:[#allocation2 + $0x38] sm:$0xff] %v1342_v34   ;;  %v1337_v35 = vpack.c.bf16 %v957_v56, %v954_v33 }
 0x277   :  { %1389 = vst [vmem:[#allocation2 + $0x30] sm:$0xff] %v1337_v35  }
 0x284   :  { %v1529_v36 = vpop.f32.mrf.mxu1 }
 0x285   :  { %v978_v39 = vadd.f32 %v1529_v36, %v2022_v5 }
 0x286   :  { %v969_v37 = vpop.f32.mrf.mxu1 }
 0x287   :  { %v970_v45 = vadd.f32 %v969_v37, %v2022_v5 }
 0x288   :  { %v1530_v38 = vpop.f32.mrf.mxu1 }
 0x289   :  { %v981_v40 = vadd.f32 %v1530_v38, %v2022_v5 }
 0x28a   :  { %v972_v43 = vpop.f32.mrf.mxu1 }
 0x28b   :  { %v1352_v46 = vpack.c.bf16 %v981_v40, %v978_v39  ;;  %v973_v47 = vadd.f32 %v972_v43, %v2022_v5 }
 0x28d   :  { %1392 = vst [vmem:[#allocation2 + $0x48] sm:$0xff] %v1352_v46   ;;  %v1347_v50 = vpack.c.bf16 %v973_v47, %v970_v45 }
 0x28f   :  { %1391 = vst [vmem:[#allocation2 + $0x40] sm:$0xff] %v1347_v50  }
 0x29c   :  { %v1533_v52 = vpop.f32.mrf.mxu1 }
 0x29d   :  { %v994_v55 = vadd.f32 %v1533_v52, %v2022_v5 }
 0x29e   :  { %v985_v41 = vpop.f32.mrf.mxu1 }
 0x29f   :  { %v986_v61 = vadd.f32 %v985_v41, %v2022_v5 }
 0x2a0   :  { %v1534_v54 = vpop.f32.mrf.mxu1 }
 0x2a1   :  { %v997_v58 = vadd.f32 %v1534_v54, %v2022_v5 }
 0x2a2   :  { %v988_v60 = vpop.f32.mrf.mxu1 }
 0x2a3   :  { %v1362_v62 = vpack.c.bf16 %v997_v58, %v994_v55  ;;  %v989_v63 = vadd.f32 %v988_v60, %v2022_v5 }
 0x2a5   :  { %1394 = vst [vmem:[#allocation2 + $0x58] sm:$0xff] %v1362_v62   ;;  %v1357_v0 = vpack.c.bf16 %v989_v63, %v986_v61 }
 0x2a7   :  { %1393 = vst [vmem:[#allocation2 + $0x50] sm:$0xff] %v1357_v0  }
 0x2b4   :  { %v1537_v1 = vpop.f32.mrf.mxu1 }
 0x2b5   :  { %v1010_v4 = vadd.f32 %v1537_v1, %v2022_v5 }
 0x2b6   :  { %v1001_v3 = vpop.f32.mrf.mxu1 }
 0x2b7   :  { %v1002_v51 = vadd.f32 %v1001_v3, %v2022_v5 }
 0x2b8   :  { %v1538_v44 = vpop.f32.mrf.mxu1 }
 0x2b9   :  { %v1013_v6 = vadd.f32 %v1538_v44, %v2022_v5 }
 0x2ba   :  { %v1004_v8 = vpop.f32.mrf.mxu1 }
 0x2bb   :  { %v1372_v14 = vpack.c.bf16 %v1013_v6, %v1010_v4  ;;  %v1005_v10 = vadd.f32 %v1004_v8, %v2022_v5 }
 0x2bd   :  { %1396 = vst [vmem:[#allocation2 + $0x68] sm:$0xff] %v1372_v14   ;;  %v1367_v11 = vpack.c.bf16 %v1005_v10, %v1002_v51 }
 0x2bf   :  { %1395 = vst [vmem:[#allocation2 + $0x60] sm:$0xff] %v1367_v11  }
 0x2cc   :  { %v1541_v32 = vpop.f32.mrf.mxu1 }
 0x2cd   :  { %v1026_v15 = vadd.f32 %v1541_v32, %v2022_v5 }
 0x2ce   :  { %v1017_v12 = vpop.f32.mrf.mxu1 }
 0x2cf   :  { %v1018_v53 = vadd.f32 %v1017_v12, %v2022_v5 }
 0x2d0   :  { %v1542_v13 = vpop.f32.mrf.mxu1 }
 0x2d1   :  { %v1029_v49 = vadd.f32 %v1542_v13, %v2022_v5 }
 0x2d2   :  { %v1020_v59 = vpop.f32.mrf.mxu1 }
 0x2d3   :  { %v1382_v57 = vpack.c.bf16 %v1029_v49, %v1026_v15  ;;  %v1021_v16 = vadd.f32 %v1020_v59, %v2022_v5 }
 0x2d5   :  { %1398 = vst [vmem:[#allocation2 + $0x78] sm:$0xff] %v1382_v57   ;;  %v1377_v17 = vpack.c.bf16 %v1021_v16, %v1018_v53 }
 0x2d7   :  { %1397 = vst [vmem:[#allocation2 + $0x70] sm:$0xff] %v1377_v17  }
 0x2d8   :  { %1609 = shalt.err (!%p1606_p4)
}
 0x2d9   :  { %s1623_s29 = smov 64   ;;  %s1624_s30 = smov 4  }
 0x2da   :  { %1203 = dma.vmem_to_hbm [thread:$0]  %s1198_s27, 2048, %s2062_s3, [#allocation3], %s1623_s29, %s1623_s29, %s1624_s30  }
 0x2db   :  { %1618 = dma.done.wait [#allocation3], 2048  }
 0x2dc   :  { %1619 = vsyncadd [#allocation3], 4294965248 }
 0x2dd   :  { %1207 = vsyncpa [#allocation3], 1 }

</bundles_post_ra>
